<compile_context>
chip_gen: v7x
topology: tpu7x:2x2x1
jax: 0.10.0
libtpu: 0.0.40
codegen_flags: <defaults>
</compile_context>

<pallas_src>
import functools

import jax
import jax.numpy as jnp
import numpy as np
from jax.experimental import pallas as pl
from jax.experimental.pallas import tpu as pltpu

LANE = 128


def _sublane_align(dtype):
    itemsize = jnp.dtype(dtype).itemsize
    if itemsize >= 4:
        return 8
    if itemsize == 2:
        return 16
    return 32


def _bce_elementwise(x, t, *, from_logits, hard_targets):
    """Per-element binary cross entropy on float32 inputs."""
    if from_logits:
        # softplus form: max(z,0) - z*t + log1p(exp(-|z|))  (fused sigmoid)
        z = x
        return jnp.maximum(z, 0.0) - z * t + jnp.log1p(jnp.exp(-jnp.abs(z)))
    if hard_targets:
        # targets in {0,1}: one log (EUP) per element.
        p = jnp.where(t > 0.5, x, 1.0 - x)
        return -jnp.maximum(jnp.log(p), -100.0)
    # exact PyTorch binary_cross_entropy form (soft targets supported).
    log_x = jnp.maximum(jnp.log(x), -100.0)
    log_1mx = jnp.maximum(jnp.log(1.0 - x), -100.0)
    return -(t * log_x + (1.0 - t) * log_1mx)


def _focal_bce_partial_kernel(x_ref, t_ref, o_ref, acc_ref, *,
                              tile_r, strip_r, tiles_per_core, rows_main,
                              need_mask, from_logits, hard_targets):
    c = pl.program_id(0)
    i = pl.program_id(1)

    @pl.when(i == 0)
    def _():
        acc_ref[...] = jnp.zeros_like(acc_ref)

    n_strips = tile_r // strip_r

    def accumulate(rows_left):
        # rows_left: None (no masking) or scalar int32 count of valid rows in
        # this block (<= 0 for duplicated clamped blocks).
        def strip(s, carry):
            if n_strips == 1:
                r0 = 0
                x = x_ref[...]
                t = t_ref[...]
            else:
                r0 = pl.multiple_of(s * strip_r, strip_r)
                x = x_ref[pl.ds(r0, strip_r), :]
                t = t_ref[pl.ds(r0, strip_r), :]
            x = x.astype(jnp.float32)
            t = t.astype(jnp.float32)
            bce = _bce_elementwise(x, t, from_logits=from_logits,
                                   hard_targets=hard_targets)
            if rows_left is not None:
                row = jax.lax.broadcasted_iota(jnp.int32, (strip_r, LANE), 0) + r0
                bce = jnp.where(row < rows_left, bce, 0.0)
            # Fold into the vreg-shaped accumulator (pure VPU adds); the
            # expensive cross-lane reduce happens in the scalar epilogue.
            acc_ref[...] += bce.reshape(strip_r // 8, 8, LANE).sum(axis=0)
            return carry

        if n_strips == 1:
            strip(0, 0)
        else:
            jax.lax.fori_loop(0, n_strips, strip, 0,
                              unroll=min(n_strips, 8))

    if need_mask:
        rows_left = rows_main - (c * tiles_per_core + i) * tile_r

        @pl.when(rows_left >= tile_r)       # interior block: no mask work
        def _():
            accumulate(None)

        @pl.when(rows_left < tile_r)        # ragged-tail / duplicated block
        def _():
            accumulate(rows_left)
    else:
        accumulate(None)

    @pl.when(i == pl.num_programs(1) - 1)
    def _():
        o_ref[0] = acc_ref[...]


def focal_loss(inputs, targets, *, alpha, gamma, reduction="mean",
               from_logits=False, hard_targets=False,
               tile_rows=2048, num_cores=1):
    """Focal loss matching the PyTorch module (reduction 'mean' or 'sum').

    from_logits=True   : inputs are logits, sigmoid fused in-kernel.
    hard_targets=True  : assumes targets in {0,1} (one log instead of two);
                         default False keeps the exact PyTorch BCE form.
    num_cores=2        : opt-in dual-TensorCore split (v7x).
    """
    if reduction not in ("mean", "sum"):
        # TODO(synk): reduction='none' (elementwise focal vector) not implemented.
        raise NotImplementedError("only 'mean' and 'sum' reductions supported")

    x = inputs.reshape(-1)          # keep native dtype; cast to f32 on the VPU
    t = targets.reshape(-1)
    n = x.shape[0]

    row_align = max(_sublane_align(x.dtype), _sublane_align(t.dtype))
    rows_main = (n // LANE) // row_align * row_align
    main_elems = rows_main * LANE

    total = jnp.float32(0.0)

    if rows_main > 0:
        if main_elems == n:
            x_main, t_main = x, t
        else:
            x_main = jax.lax.slice(x, (0,), (main_elems,))
            t_main = jax.lax.slice(t, (0,), (main_elems,))
        x2 = x_main.reshape(rows_main, LANE)
        t2 = t_main.reshape(rows_main, LANE)

        tile_cap = max(row_align, (tile_rows // row_align) * row_align)
        tile_r = min(tile_cap, rows_main)
        num_tiles = -(-rows_main // tile_r)
        tiles_per_core = -(-num_tiles // num_cores)
        need_mask = (num_cores * tiles_per_core * tile_r) != rows_main

        strip_r = tile_r
        for cand in (128, 64, 32, 16, 8):
            if cand >= row_align and tile_r % cand == 0:
                strip_r = cand
                break

        def block_map(c, i):
            # Clamp so duplicated / tail block indices never start a fully
            # out-of-bounds DMA; the in-kernel mask zeroes their contribution.
            return (jnp.minimum(c * tiles_per_core + i, num_tiles - 1), 0)

        kernel = functools.partial(
            _focal_bce_partial_kernel,
            tile_r=tile_r, strip_r=strip_r, tiles_per_core=tiles_per_core,
            rows_main=rows_main, need_mask=need_mask,
            from_logits=from_logits, hard_targets=hard_targets)

        if num_cores > 1:
            core_sem = getattr(pltpu, "CORE_PARALLEL", "parallel")
            dims = (core_sem, "arbitrary")
        else:
            dims = ("arbitrary", "arbitrary")

        block_bytes = tile_r * LANE * (x2.dtype.itemsize + t2.dtype.itemsize)
        pipeline_bytes = 2 * block_bytes + 4 * (8 * LANE * 4)
        compiler_kwargs = dict(dimension_semantics=dims)
        if pipeline_bytes > (12 << 20):
            # Only raise the scoped-VMEM limit when big tiles actually need it
            # (keeps v5e's 16 MiB default happy for the default config).
            compiler_kwargs["vmem_limit_bytes"] = min(
                int(2 * pipeline_bytes), 64 << 20)

        in_bytes = (x2.size * x2.dtype.itemsize) + (t2.size * t2.dtype.itemsize)
        partials = pl.pallas_call(
            kernel,
            out_shape=jax.ShapeDtypeStruct((num_cores, 8, LANE), jnp.float32),
            grid=(num_cores, tiles_per_core),
            in_specs=[pl.BlockSpec((tile_r, LANE), block_map),
                      pl.BlockSpec((tile_r, LANE), block_map)],
            out_specs=pl.BlockSpec((1, 8, LANE), lambda c, i: (c, 0, 0)),
            scratch_shapes=[pltpu.VMEM((8, LANE), jnp.float32)],
            compiler_params=pltpu.CompilerParams(**compiler_kwargs),
            cost_estimate=pl.CostEstimate(
                flops=8 * rows_main * LANE,
                transcendentals=(1 if (from_logits or hard_targets) else 2)
                                 * rows_main * LANE,
                bytes_accessed=in_bytes + num_cores * 8 * LANE * 4),
        )(x2, t2)
        total = total + jnp.sum(partials)

    if main_elems != n:
        # < row_align*128 leftover elements: trivial plain-JAX epilogue
        # (replaces the old whole-array jnp.pad copy).
        x_tail = jax.lax.slice(x, (main_elems,), (n,)).astype(jnp.float32)
        t_tail = jax.lax.slice(t, (main_elems,), (n,)).astype(jnp.float32)
        total = total + jnp.sum(_bce_elementwise(
            x_tail, t_tail, from_logits=from_logits, hard_targets=hard_targets))

    bce = total / n if reduction == "mean" else total
    # bce ~ 0 can give a tiny negative (1 - exp(-bce)) which would NaN under a
    # non-integer gamma; clamp the base.
    base = jnp.maximum(1.0 - jnp.exp(-bce), 0.0)
    return alpha * (base ** gamma) * bce


def _focal_loss_ref(inputs, targets, *, alpha, gamma, reduction="mean",
                    from_logits=False):
    x = inputs.reshape(-1).astype(jnp.float32)
    t = targets.reshape(-1).astype(jnp.float32)
    if from_logits:
        x = jax.nn.sigmoid(x)
    log_x = jnp.maximum(jnp.log(x), -100.0)
    log_1mx = jnp.maximum(jnp.log(1.0 - x), -100.0)
    bce_elem = -(t * log_x + (1.0 - t) * log_1mx)
    bce = jnp.mean(bce_elem) if reduction == "mean" else jnp.sum(bce_elem)
    return alpha * (1.0 - jnp.exp(-bce)) ** gamma * bce


if __name__ == "__main__":
    key = jax.random.PRNGKey(0)
    k1, k2, k3, k4, k5, k6 = jax.random.split(key, 6)

    alpha, gamma = 0.8, 2.0

    # Case 1: NCHW probabilities (batch=2, channels=4, spatial=16x16), mean.
    shape = (2, 4, 16, 16)
    logits = jax.random.normal(k1, shape, dtype=jnp.float32)
    probs = jax.nn.sigmoid(logits)          # matches F.binary_cross_entropy use
    targets = (jax.random.uniform(k2, shape) > 0.5).astype(jnp.float32)

    out = focal_loss(probs, targets, alpha=alpha, gamma=gamma, reduction="mean")
    out = jax.block_until_ready(out)
    ref = _focal_loss_ref(probs, targets, alpha=alpha, gamma=gamma,
                          reduction="mean")
    np.testing.assert_allclose(np.asarray(out), np.asarray(ref),
                               rtol=1e-5, atol=1e-6)

    # Case 2: sum reduction.
    out_sum = focal_loss(probs, targets, alpha=alpha, gamma=gamma,
                         reduction="sum")
    out_sum = jax.block_until_ready(out_sum)
    ref_sum = _focal_loss_ref(probs, targets, alpha=alpha, gamma=gamma,
                              reduction="sum")
    np.testing.assert_allclose(np.asarray(out_sum), np.asarray(ref_sum),
                               rtol=1e-5, atol=1e-4)

    # Case 3: shape whose row count doesn't divide the tile -> exercises the
    # runtime-gated ragged-tail mask path (small tile on purpose).
    shape3 = (2, 4, 16, 24)
    logits3 = jax.random.normal(k3, shape3, dtype=jnp.float32)
    probs3 = jax.nn.sigmoid(logits3)
    targets3 = (jax.random.uniform(k4, shape3) > 0.5).astype(jnp.float32)
    out3 = focal_loss(probs3, targets3, alpha=alpha, gamma=gamma,
                      reduction="mean", tile_rows=16)
    out3 = jax.block_until_ready(out3)
    ref3 = _focal_loss_ref(probs3, targets3, alpha=alpha, gamma=gamma,
                           reduction="mean")
    np.testing.assert_allclose(np.asarray(out3), np.asarray(ref3),
                               rtol=1e-5, atol=1e-6)

    # Case 4: fused-sigmoid (from_logits) path.
    out4 = focal_loss(logits, targets, alpha=alpha, gamma=gamma,
                      reduction="mean", from_logits=True)
    out4 = jax.block_until_ready(out4)
    ref4 = _focal_loss_ref(logits, targets, alpha=alpha, gamma=gamma,
                           reduction="mean", from_logits=True)
    np.testing.assert_allclose(np.asarray(out4), np.asarray(ref4),
                               rtol=1e-5, atol=1e-6)

    # Case 5: larger block -> exercises the strip-mined fori_loop body.
    shape5 = (2, 4, 32, 128)
    logits5 = jax.random.normal(k5, shape5, dtype=jnp.float32)
    probs5 = jax.nn.sigmoid(logits5)
    targets5 = (jax.random.uniform(k6, shape5) > 0.5).astype(jnp.float32)
    out5 = focal_loss(probs5, targets5, alpha=alpha, gamma=gamma,
                      reduction="mean")
    out5 = jax.block_until_ready(out5)
    ref5 = _focal_loss_ref(probs5, targets5, alpha=alpha, gamma=gamma,
                           reduction="mean")
    np.testing.assert_allclose(np.asarray(out5), np.asarray(ref5),
                               rtol=1e-5, atol=1e-6)

    print("KERNEL_OK")
</pallas_src>

<mosaic_0001>
module attributes {stable_mosaic.version = 11 : i64} {
  func.func @_focal_bce_partial_kernel(%arg0: i32, %arg1: i32, %arg2: memref<16x128xf32, #tpu.memory_space<vmem>>, %arg3: memref<16x128xf32, #tpu.memory_space<vmem>>, %arg4: memref<1x8x128xf32, #tpu.memory_space<vmem>>, %arg5: memref<8x128xf32, #tpu.memory_space<vmem>>) attributes {dimension_semantics = [#tpu.dimension_semantics<arbitrary>, #tpu.dimension_semantics<arbitrary>], iteration_bounds = array<i64: 1, 1>, scalar_prefetch = 0 : i64, scratch_operands = 1 : i64, tpu.core_type = #tpu.core_type<tc>, window_params = [{transform_indices = @transform_0, window_bounds = array<i64: 16, 128>}, {transform_indices = @transform_1, window_bounds = array<i64: 16, 128>}, {transform_indices = @transform_2, window_bounds = array<i64: 1, 8, 128>}]} {
    %c0_i32 = arith.constant 0 : i32
    %0 = arith.cmpi eq, %arg1, %c0_i32 : i32
    %1 = arith.extui %0 : i1 to i32
    %c0_i32_0 = arith.constant 0 : i32
    %2 = arith.cmpi ne, %1, %c0_i32_0 : i32
    scf.if %2 {
      %cst_15 = arith.constant 0.000000e+00 : f32
      %28 = vector.broadcast %cst_15 : f32 to vector<8x128xf32>
      %c0_16 = arith.constant 0 : index
      %c0_17 = arith.constant 0 : index
      %29 = vector.load %arg5[%c0_16, %c0_17] : memref<8x128xf32, #tpu.memory_space<vmem>>, vector<8x128xf32>
      tpu.vector_store %arg5[%c0_16, %c0_17], %28 {strides = array<i32>} : memref<8x128xf32, #tpu.memory_space<vmem>>, vector<8x128xf32>,
    } else {
    }
    %c0 = arith.constant 0 : index
    %c0_1 = arith.constant 0 : index
    %3 = vector.load %arg2[%c0, %c0_1] : memref<16x128xf32, #tpu.memory_space<vmem>>, vector<16x128xf32>
    %c0_2 = arith.constant 0 : index
    %c0_3 = arith.constant 0 : index
    %4 = vector.load %arg3[%c0_2, %c0_3] : memref<16x128xf32, #tpu.memory_space<vmem>>, vector<16x128xf32>
    %5 = math.log %3 : vector<16x128xf32>
    %cst = arith.constant -1.000000e+02 : f32
    %6 = vector.broadcast %cst : f32 to vector<16x128xf32>
    %7 = arith.maximumf %5, %6 : vector<16x128xf32>
    %cst_4 = arith.constant 1.000000e+00 : f32
    %8 = vector.broadcast %cst_4 : f32 to vector<16x128xf32>
    %9 = arith.subf %8, %3 : vector<16x128xf32>
    %10 = math.log %9 : vector<16x128xf32>
    %cst_5 = arith.constant -1.000000e+02 : f32
    %11 = vector.broadcast %cst_5 : f32 to vector<16x128xf32>
    %12 = arith.maximumf %10, %11 : vector<16x128xf32>
    %13 = arith.mulf %4, %7 : vector<16x128xf32>
    %cst_6 = arith.constant 1.000000e+00 : f32
    %14 = vector.broadcast %cst_6 : f32 to vector<16x128xf32>
    %15 = arith.subf %14, %4 : vector<16x128xf32>
    %16 = arith.mulf %15, %12 : vector<16x128xf32>
    %17 = arith.addf %13, %16 : vector<16x128xf32>
    %cst_7 = arith.constant 0.000000e+00 : f32
    %18 = vector.broadcast %cst_7 : f32 to vector<16x128xf32>
    %19 = arith.subf %18, %17 : vector<16x128xf32>
    %c0_8 = arith.constant 0 : index
    %c0_9 = arith.constant 0 : index
    %20 = vector.load %arg5[%c0_8, %c0_9] : memref<8x128xf32, #tpu.memory_space<vmem>>, vector<8x128xf32>
    %21 = vector.shape_cast %19 : vector<16x128xf32> to vector<2x8x128xf32>
    %cst_10 = arith.constant dense<0.000000e+00> : vector<8x128xf32>
    %22 = vector.multi_reduction <add>, %21, %cst_10 [0] : vector<2x8x128xf32> to vector<8x128xf32>
    %23 = arith.addf %20, %22 : vector<8x128xf32>
    %c0_11 = arith.constant 0 : index
    %c0_12 = arith.constant 0 : index
    %24 = vector.load %arg5[%c0_11, %c0_12] : memref<8x128xf32, #tpu.memory_space<vmem>>, vector<8x128xf32>
    tpu.vector_store %arg5[%c0_11, %c0_12], %23 {strides = array<i32>} : memref<8x128xf32, #tpu.memory_space<vmem>>, vector<8x128xf32>,
    %c0_i32_13 = arith.constant 0 : i32
    %25 = arith.cmpi eq, %arg1, %c0_i32_13 : i32
    %26 = arith.extui %25 : i1 to i32
    %c0_i32_14 = arith.constant 0 : i32
    %27 = arith.cmpi ne, %26, %c0_i32_14 : i32
    scf.if %27 {
      %c0_15 = arith.constant 0 : index
      %c0_16 = arith.constant 0 : index
      %28 = vector.load %arg5[%c0_15, %c0_16] : memref<8x128xf32, #tpu.memory_space<vmem>>, vector<8x128xf32>
      %c0_17 = arith.constant 0 : index
      %c0_18 = arith.constant 0 : index
      %c0_19 = arith.constant 0 : index
      %29 = vector.load %arg4[%c0_17, %c0_18, %c0_19] : memref<1x8x128xf32, #tpu.memory_space<vmem>>, vector<1x8x128xf32>
      %30 = vector.shape_cast %29 : vector<1x8x128xf32> to vector<8x128xf32>
      %31 = vector.shape_cast %28 : vector<8x128xf32> to vector<1x8x128xf32>
      tpu.vector_store %arg4[%c0_17, %c0_18, %c0_19], %31 {strides = array<i32>} : memref<1x8x128xf32, #tpu.memory_space<vmem>>, vector<1x8x128xf32>,
    } else {
    }
    return
  }
  func.func @transform_0(%arg0: i32, %arg1: i32) -> (i32, i32) {
    %c1_i32 = arith.constant 1 : i32
    %0 = arith.muli %arg0, %c1_i32 : i32
    %1 = arith.addi %0, %arg1 : i32
    %c0_i32 = arith.constant 0 : i32
    %2 = arith.minsi %1, %c0_i32 : i32
    %c0_i32_0 = arith.constant 0 : i32
    %c0_i32_1 = arith.constant 0 : i32
    return %2, %c0_i32_0 : i32, i32
  }
  func.func @transform_1(%arg0: i32, %arg1: i32) -> (i32, i32) {
    %c1_i32 = arith.constant 1 : i32
    %0 = arith.muli %arg0, %c1_i32 : i32
    %1 = arith.addi %0, %arg1 : i32
    %c0_i32 = arith.constant 0 : i32
    %2 = arith.minsi %1, %c0_i32 : i32
    %c0_i32_0 = arith.constant 0 : i32
    %c0_i32_1 = arith.constant 0 : i32
    return %2, %c0_i32_0 : i32, i32
  }
  func.func @transform_2(%arg0: i32, %arg1: i32) -> (i32, i32, i32) {
    %c0_i32 = arith.constant 0 : i32
    %c0_i32_0 = arith.constant 0 : i32
    %c0_i32_1 = arith.constant 0 : i32
    return %arg0, %c0_i32, %c0_i32_0 : i32, i32, i32
  }
}

</mosaic_0001>

<bundles_post_ra>
// kernel: tpu_custom_call.1
= control target key start
LH: loop header
LB: loop body
LE: loop exit
PB: predicated region body
PF: predicated region fallthrough
CT: control target
= control target key end

     0   :  { %7 = vsyncpa [#allocation4], 0  ;;  %s263_s0 = inlined_call_operand.hbm [shape: f32[16,128], index: 0, kind: input, shape index: {}]   ;;  %s264_s1 = inlined_call_operand.hbm [shape: f32[16,128], index: 1, kind: input, shape index: {}]   ;;  %s265_s2 = inlined_call_operand.hbm [shape: f32[1,8,128], index: 2, kind: output, shape index: {}]  }
   0x1   :  { %8 = vsyncpa [#allocation7], 0 }
   0x2   :  { %9 = vsyncpa [#allocation5], 0  ;;  %s207_s9 = smov [#allocation3]   ;;  %s135_s13 = scalar_lea.hbm %s263_s0, 256 }
   0x3   :  { %s21_s10 = sshll.u32 %s207_s9, 4  ;;  %p136_p0 = scmp.ne.s32.totalorder %s263_s0, %s135_s13  ;;  %s22_s10 = int_to_ptr.vmem [resolvable:$true] %s21_s10 }
   0x4   :  { %p139_p1 = scmp.lt.u32.totalorder %s135_s13, %s263_s0 }
   0x6   :  { %p141_p2 = pnand %p139_p1, %p136_p0 }
   0x8   :  { %144 = shalt.err (!%p141_p2)
}
   0x9   :  { %s145_s18 = scalar_lea.vmem %s22_s10, 256  ;;  %p150_p4 = scmp.lt.s32.totalorder %s22_s10, %s22_s10 }
   0xa   :  { %p146_p3 = scmp.ne.s32.totalorder %s22_s10, %s145_s18  ;;  %p151_p5 = scmp.lt.s32.totalorder %s145_s18, %s145_s18 }
   0xc   :  { %p152_p6 = por %p151_p5, %p150_p4 }
   0xe   :  { %p153_p7 = pnand %p152_p6, %p146_p3 }
  0x10   :  { %156 = shalt.err (!%p153_p7)
}
  0x11   :  { %s208_s19 = smov 128   ;;  %s209_s20 = smov 8  }
  0x12   :  { %27 = dma.hbm_to_vmem [thread:$0]  %s263_s0, 256, %s22_s10, [#allocation4], %s208_s19, %s208_s19, %s209_s20  }
  0x13   :  { %s210_s23 = smov [#allocation6]   ;;  %s157_s27 = scalar_lea.hbm %s264_s1, 256 }
  0x14   :  { %s39_s24 = sshll.u32 %s210_s23, 4  ;;  %p158_p8 = scmp.ne.s32.totalorder %s264_s1, %s157_s27  ;;  %s40_s24 = int_to_ptr.vmem [resolvable:$true] %s39_s24 }
  0x15   :  { %p161_p9 = scmp.lt.u32.totalorder %s157_s27, %s264_s1 }
  0x17   :  { %p163_p10 = pnand %p161_p9, %p158_p8 }
  0x19   :  { %166 = shalt.err (!%p163_p10)
}
  0x1a   :  { %s167_s4 = scalar_lea.vmem %s40_s24, 256  ;;  %p172_p12 = scmp.lt.s32.totalorder %s40_s24, %s40_s24 }
  0x1b   :  { %p168_p11 = scmp.ne.s32.totalorder %s40_s24, %s167_s4  ;;  %p173_p13 = scmp.lt.s32.totalorder %s167_s4, %s167_s4 }
  0x1d   :  { %p174_p0 = por %p173_p13, %p172_p12 }
  0x1f   :  { %p175_p1 = pnand %p174_p0, %p168_p11 }
  0x21   :  { %178 = shalt.err (!%p175_p1)
}
  0x22   :  { %45 = dma.hbm_to_vmem [thread:$0]  %s264_s1, 256, %s40_s24, [#allocation7], %s208_s19, %s208_s19, %s209_s20  }
  0x23   :  { %201 = dma.done.wait [#allocation4], 256  }
  0x24   :  { %202 = vsyncadd [#allocation4], 4294967040 }
  0x25   :  { %203 = dma.done.wait [#allocation7], 256  }
  0x26   :  { %204 = vsyncadd [#allocation7], 4294967040  ;;  %v65_v0 = vld [vmem:[#allocation3] sm:$0xff]  ;;  %v66_v1 = vld [vmem:[#allocation3 + $0x8] sm:$0xff]  ;;  %s211_s1 = smov [#allocation8]  }
  0x27   :  { %127 = vlog2.f32 %v65_v0  ;;  %v75_v2 = vsub.f32 1.0, %v65_v0  ;;  %v76_v3 = vsub.f32 1.0, %v66_v1  ;;  %v67_v5 = vld [vmem:[#allocation6] sm:$0xff]  ;;  %v68_v7 = vld [vmem:[#allocation6 + $0x8] sm:$0xff]  ;;  %s108_s6 = sshll.u32 %s211_s1, 4  ;;  %s109_s6 = int_to_ptr.vmem [resolvable:$true] %s108_s6 }
  0x28   :  { %129 = vlog2.f32 %v66_v1  ;;  %v85_v14 = vsub.f32 1.0, %v67_v5  ;;  %v86_v17 = vsub.f32 1.0, %v68_v7  ;;  %s179_s7 = scalar_lea.vmem %s109_s6, 128  ;;  %p184_p3 = scmp.lt.s32.totalorder %s109_s6, %s109_s6 }
  0x29   :  { %131 = vlog2.f32 %v75_v2  ;;  %p180_p2 = scmp.ne.s32.totalorder %s109_s6, %s179_s7  ;;  %p185_p4 = scmp.lt.s32.totalorder %s179_s7, %s179_s7 }
  0x2a   :  { %133 = vlog2.f32 %v76_v3 }
  0x2b   :  { %p186_p5 = por %p185_p4, %p184_p3 }
  0x2d   :  { %p187_p6 = pnand %p186_p5, %p180_p2 }
  0x31   :  { %v128_v4 = vpop.eup %127 }
  0x32   :  { %v130_v6 = vpop.eup %129  ;;  %v70_v8 = vmul.f32 0.6931472, %v128_v4 }
  0x33   :  { %v132_v9 = vpop.eup %131  ;;  %v72_v10 = vmul.f32 0.6931472, %v130_v6 }
  0x34   :  { %v134_v11 = vpop.eup %133  ;;  %v73_v12 = vmax.f32 %v70_v8, -100.0  ;;  %v78_v13 = vmul.f32 0.6931472, %v132_v9 }
  0x35   :  { %v74_v15 = vmax.f32 %v72_v10, -100.0  ;;  %v80_v16 = vmul.f32 0.6931472, %v134_v11 }
  0x36   :  { %v81_v18 = vmax.f32 %v78_v13, -100.0  ;;  %v83_v19 = vmul.f32 %v73_v12, %v67_v5 }
  0x37   :  { %v82_v20 = vmax.f32 %v80_v16, -100.0  ;;  %v84_v21 = vmul.f32 %v74_v15, %v68_v7 }
  0x38   :  { %v87_v22 = vmul.f32 %v85_v14, %v81_v18 }
  0x39   :  { %v88_v23 = vmul.f32 %v86_v17, %v82_v20 }
  0x3a   :  { %v89_v24 = vadd.f32 %v87_v22, %v83_v19 }
  0x3b   :  { %v90_v25 = vadd.f32 %v88_v23, %v84_v21 }
  0x3c   :  { %v91_v26 = vsub.f32 0.0, %v89_v24 }
  0x3d   :  { %v92_v27 = vsub.f32 0.0, %v90_v25 }
  0x3f   :  { %v94_v28 = vadd.f32 %v92_v27, %v91_v26 }
  0x41   :  { %101 = vst [vmem:[#allocation8] sm:$0xff] %v94_v28 }
  0x42   :  { %190 = shalt.err (!%p187_p6)
}
  0x43   :  { %s191_s10 = scalar_lea.hbm %s265_s2, 128 }
  0x44   :  { %p192_p7 = scmp.ne.s32.totalorder %s265_s2, %s191_s10  ;;  %p195_p8 = scmp.lt.u32.totalorder %s191_s10, %s265_s2 }
  0x46   :  { %p197_p9 = pnand %p195_p8, %p192_p7 }
  0x48   :  { %200 = shalt.err (!%p197_p9)
}
  0x49   :  { %111 = dma.vmem_to_hbm [thread:$0]  %s109_s6, 128, %s265_s2, [#allocation5]  }
  0x4a   :  { %205 = dma.done.wait [#allocation5], 128  }
  0x4b   :  { %206 = vsyncadd [#allocation5], 4294967168 }
  0x4c   :  { %115 = vsyncpa [#allocation4], 1 }
  0x4d   :  { %116 = vsyncpa [#allocation7], 1 }
  0x4e   :  { %117 = vsyncpa [#allocation5], 1 }

</bundles_post_ra>
